<compile_context>
chip_gen: v7x
topology: tpu7x:2x2x1
jax: 0.10.0
libtpu: 0.0.40
codegen_flags: <defaults>
</compile_context>

<pallas_src>
import functools

import numpy as np
import jax
import jax.numpy as jnp
from jax.experimental import pallas as pl
from jax.experimental.pallas import tpu as pltpu

EPS = 1e-5  # nn.InstanceNorm2d default eps


# ----------------------------------------------------------------------------
# Kernel
# ----------------------------------------------------------------------------
def _residual_block_kernel(x_ref, m1_ref, b1_ref, m2_ref, b2_ref, s_ref, a_ref,
                           o_ref, *, inv_hw):
    # x_ref : (Bt, H, W*C)        lane-dense input block
    # m*_ref: (3, W*C, W*C)       per-dy block-banded conv weights (dx + W-reflect folded in)
    # b*_ref: (1, W*C)            conv bias tiled over W
    # s_ref : (3, Bt*H, Bt*H)     [0]=up row-shift, [1]=down row-shift (H-reflect), [2]=per-image ones
    # a_ref : (W*C, W*C)          per-channel lane sum/broadcast selector
    # o_ref : (Bt, H, W*C)
    Bt, H, WC = x_ref.shape
    BtH = Bt * H

    x2d = x_ref[...].reshape(BtH, WC)      # collapse leading dims only (minor dim untouched)
    s_up = s_ref[0]
    s_dn = s_ref[1]
    q = s_ref[2]
    a = a_ref[...]

    def conv3x3(y2d, m_ref, b_ref):
        # 3 lane-dense MXU dots (dx taps + W reflection in the weights) plus
        # 2 small row-shift dots (dy taps + H reflection). Bias in the epilogue.
        t0 = jnp.dot(y2d, m_ref[0], preferred_element_type=jnp.float32)
        t1 = jnp.dot(y2d, m_ref[1], preferred_element_type=jnp.float32)
        t2 = jnp.dot(y2d, m_ref[2], preferred_element_type=jnp.float32)
        return (jnp.dot(s_up, t0, preferred_element_type=jnp.float32)
                + t1
                + jnp.dot(s_dn, t2, preferred_element_type=jnp.float32)
                + b_ref[...])

    def instance_norm(y2d):
        # Two-pass IN; all reductions AND broadcasts are MXU matmuls:
        #   Q : per-image row sum + row broadcast (block-ones)
        #   A : per-channel lane sum + lane broadcast (channel selector)
        mean = jnp.dot(jnp.dot(q, y2d, preferred_element_type=jnp.float32), a,
                       preferred_element_type=jnp.float32) * inv_hw
        cen = y2d - mean
        var = jnp.dot(jnp.dot(q, cen * cen, preferred_element_type=jnp.float32),
                      a, preferred_element_type=jnp.float32) * inv_hw
        return cen * jax.lax.rsqrt(var + EPS)       # rsqrt -> EUP slot

    # conv1 -> IN -> ReLU -> conv2 -> IN -> residual add
    h = jnp.maximum(instance_norm(conv3x3(x2d, m1_ref, b1_ref)), 0.0)
    h = instance_norm(conv3x3(h, m2_ref, b2_ref))
    o_ref[...] = (x2d + h).reshape(Bt, H, WC)       # full-width, unmasked store


# ----------------------------------------------------------------------------
# Wrapper-side constant-matrix construction
# ----------------------------------------------------------------------------
def _reflect(i, n):
    if i < 0:
        return -i
    if i >= n:
        return 2 * n - 2 - i
    return i


def _build_tap_matrices(w, W, C):
    # w: (Cout, Cin, 3, 3) PyTorch layout (may be traced).
    # Returns (3, W*C, W*C): M[dy][wi*C+ci, wo*C+co] += w[co, ci, dy, dx],
    # with wi = reflect(wo + dx - 1)  (dx taps + W reflection folded in).
    placements = []
    for dx in range(3):
        p = np.zeros((W, W), np.float32)
        for wo in range(W):
            p[_reflect(wo + dx - 1, W), wo] = 1.0
        placements.append(jnp.asarray(p))
    w = w.astype(jnp.float32)
    Ms = []
    for dy in range(3):
        M = sum(jnp.kron(placements[dx], w[:, :, dy, dx].T) for dx in range(3))
        Ms.append(M)
    return jnp.stack(Ms)


def _build_row_matrices(Bt, H):
    # (3, Bt*H, Bt*H): [0]=dy=0 row gather (reflect(h-1)), [1]=dy=2 (reflect(h+1)),
    # [2]=per-image block-ones (InstanceNorm row sum + broadcast).
    s_up = np.zeros((H, H), np.float32)
    s_dn = np.zeros((H, H), np.float32)
    for h in range(H):
        s_up[h, _reflect(h - 1, H)] = 1.0
        s_dn[h, _reflect(h + 1, H)] = 1.0
    eye = np.eye(Bt, dtype=np.float32)
    return jnp.asarray(np.stack([np.kron(eye, s_up),
                                 np.kron(eye, s_dn),
                                 np.kron(eye, np.ones((H, H), np.float32))]))


def _build_channel_matrix(W, C):
    # (W*C, W*C): A[w*C+c, w'*C+c'] = (c == c')  — per-channel lane sum/broadcast.
    return jnp.asarray(np.tile(np.eye(C, dtype=np.float32), (W, W)))


# ----------------------------------------------------------------------------
# Public entry point
# ----------------------------------------------------------------------------
def residual_block(x_nchw, w1, b1, w2, b2):
    """x_nchw: (B, C, H, W); w*: (Cout, Cin, 3, 3) PyTorch layout; b*: (C,)."""
    B, C, H, W = x_nchw.shape
    assert H >= 2 and W >= 2, "ReflectionPad2d(1) requires H, W >= 2"
    WC = W * C

    # Lane-dense layout: NCHW -> NHWC -> (B, H, W*C); W*C (=128 here) is the lane axis.
    x = jnp.transpose(x_nchw, (0, 2, 3, 1)).reshape(B, H, WC).astype(jnp.float32)

    # Batch tile: prefer >= 2 grid steps (dual-TC v7x sharding of the "parallel"
    # axis) while keeping the double-buffered in+out blocks well inside VMEM.
    divs = [bt for bt in range(1, B + 1) if B % bt == 0]
    fit = [bt for bt in divs if bt * H * WC * 4 * 4 <= (16 << 20)]
    multi = [bt for bt in fit if B // bt >= 2]
    Bt = max(multi) if multi else max(fit)

    m1 = _build_tap_matrices(w1, W, C)
    m2 = _build_tap_matrices(w2, W, C)
    b1r = jnp.tile(b1.astype(jnp.float32), W).reshape(1, WC)
    b2r = jnp.tile(b2.astype(jnp.float32), W).reshape(1, WC)
    s = _build_row_matrices(Bt, H)
    a = _build_channel_matrix(W, C)

    kernel = functools.partial(_residual_block_kernel, inv_hw=1.0 / (H * W))

    out = pl.pallas_call(
        kernel,
        out_shape=jax.ShapeDtypeStruct((B, H, WC), jnp.float32),
        grid_spec=pltpu.PrefetchScalarGridSpec(
            num_scalar_prefetch=0,
            grid=(B // Bt,),
            in_specs=[
                pl.BlockSpec((Bt, H, WC), lambda i: (i, 0, 0)),
                pl.BlockSpec((3, WC, WC), lambda i: (0, 0, 0)),
                pl.BlockSpec((1, WC), lambda i: (0, 0)),
                pl.BlockSpec((3, WC, WC), lambda i: (0, 0, 0)),
                pl.BlockSpec((1, WC), lambda i: (0, 0)),
                pl.BlockSpec((3, Bt * H, Bt * H), lambda i: (0, 0, 0)),
                pl.BlockSpec((WC, WC), lambda i: (0, 0)),
            ],
            out_specs=pl.BlockSpec((Bt, H, WC), lambda i: (i, 0, 0)),
        ),
        compiler_params=pltpu.CompilerParams(
            dimension_semantics=("parallel",)),
    )(x, m1, b1r, m2, b2r, s, a)

    return jnp.transpose(out.reshape(B, H, W, C), (0, 3, 1, 2))  # back to NCHW


# ----------------------------------------------------------------------------
# Pure-JAX reference (NCHW), mirroring the PyTorch module
# ----------------------------------------------------------------------------
def residual_block_ref(x, w1, b1, w2, b2):
    def conv(h, w, b):
        hp = jnp.pad(h, ((0, 0), (0, 0), (1, 1), (1, 1)), mode="reflect")
        y = jax.lax.conv_general_dilated(
            hp, w, window_strides=(1, 1), padding="VALID",
            dimension_numbers=("NCHW", "OIHW", "NCHW"),
            precision=jax.lax.Precision.HIGHEST)
        return y + b[None, :, None, None]

    def inorm(h):
        mean = h.mean(axis=(2, 3), keepdims=True)
        var = ((h - mean) ** 2).mean(axis=(2, 3), keepdims=True)
        return (h - mean) / jnp.sqrt(var + EPS)

    h = jnp.maximum(inorm(conv(x, w1, b1)), 0.0)
    h = inorm(conv(h, w2, b2))
    return x + h


if __name__ == "__main__":
    B, C, H, W = 2, 8, 16, 16  # features = 8  ->  W*C = 128 (lane-dense)

    key = jax.random.PRNGKey(0)
    kx, kw1, kb1, kw2, kb2 = jax.random.split(key, 5)
    x = jax.random.normal(kx, (B, C, H, W), dtype=jnp.float32)
    w1 = jax.random.normal(kw1, (C, C, 3, 3), dtype=jnp.float32) * 0.1
    b1 = jax.random.normal(kb1, (C,), dtype=jnp.float32) * 0.1
    w2 = jax.random.normal(kw2, (C, C, 3, 3), dtype=jnp.float32) * 0.1
    b2 = jax.random.normal(kb2, (C,), dtype=jnp.float32) * 0.1

    out = jax.block_until_ready(jax.jit(residual_block)(x, w1, b1, w2, b2))
    ref = jax.block_until_ready(residual_block_ref(x, w1, b1, w2, b2))

    assert out.shape == (B, C, H, W)
    assert jnp.allclose(out, ref, atol=2e-4, rtol=2e-4), (
        f"max abs err = {jnp.max(jnp.abs(out - ref))}")
    print("KERNEL_OK")
</pallas_src>

<mosaic_0001>
module attributes {stable_mosaic.version = 11 : i64} {
  func.func @_residual_block_kernel(%arg0: i32, %arg1: memref<1x16x128xf32, #tpu.memory_space<vmem>>, %arg2: memref<3x128x128xf32, #tpu.memory_space<vmem>>, %arg3: memref<1x128xf32, #tpu.memory_space<vmem>>, %arg4: memref<3x128x128xf32, #tpu.memory_space<vmem>>, %arg5: memref<1x128xf32, #tpu.memory_space<vmem>>, %arg6: memref<3x16x16xf32, #tpu.memory_space<vmem>>, %arg7: memref<128x128xf32, #tpu.memory_space<vmem>>, %arg8: memref<1x16x128xf32, #tpu.memory_space<vmem>>) attributes {dimension_semantics = [#tpu.dimension_semantics<parallel>], iteration_bounds = array<i64: 2>, scalar_prefetch = 0 : i64, scratch_operands = 0 : i64, tpu.core_type = #tpu.core_type<tc>, window_params = [{transform_indices = @transform_0, window_bounds = array<i64: 1, 16, 128>}, {pipeline_mode = #tpu.pipeline_mode<synchronous>, transform_indices = @transform_1, window_bounds = array<i64: 3, 128, 128>}, {pipeline_mode = #tpu.pipeline_mode<synchronous>, transform_indices = @transform_2, window_bounds = array<i64: 1, 128>}, {pipeline_mode = #tpu.pipeline_mode<synchronous>, transform_indices = @transform_3, window_bounds = array<i64: 3, 128, 128>}, {pipeline_mode = #tpu.pipeline_mode<synchronous>, transform_indices = @transform_4, window_bounds = array<i64: 1, 128>}, {pipeline_mode = #tpu.pipeline_mode<synchronous>, transform_indices = @transform_5, window_bounds = array<i64: 3, 16, 16>}, {pipeline_mode = #tpu.pipeline_mode<synchronous>, transform_indices = @transform_6, window_bounds = array<i64: 128, 128>}, {transform_indices = @transform_7, window_bounds = array<i64: 1, 16, 128>}]} {
    %c0 = arith.constant 0 : index
    %c0_0 = arith.constant 0 : index
    %c0_1 = arith.constant 0 : index
    %0 = vector.load %arg1[%c0, %c0_0, %c0_1] : memref<1x16x128xf32, #tpu.memory_space<vmem>>, vector<1x16x128xf32>
    %1 = vector.shape_cast %0 : vector<1x16x128xf32> to vector<16x128xf32>
    %c0_2 = arith.constant 0 : index
    %c0_3 = arith.constant 0 : index
    %c0_4 = arith.constant 0 : index
    %2 = vector.load %arg6[%c0_2, %c0_3, %c0_4] : memref<3x16x16xf32, #tpu.memory_space<vmem>>, vector<1x16x16xf32>
    %3 = vector.shape_cast %2 : vector<1x16x16xf32> to vector<16x16xf32>
    %c1 = arith.constant 1 : index
    %c0_5 = arith.constant 0 : index
    %c0_6 = arith.constant 0 : index
    %4 = vector.load %arg6[%c1, %c0_5, %c0_6] : memref<3x16x16xf32, #tpu.memory_space<vmem>>, vector<1x16x16xf32>
    %5 = vector.shape_cast %4 : vector<1x16x16xf32> to vector<16x16xf32>
    %c2 = arith.constant 2 : index
    %c0_7 = arith.constant 0 : index
    %c0_8 = arith.constant 0 : index
    %6 = vector.load %arg6[%c2, %c0_7, %c0_8] : memref<3x16x16xf32, #tpu.memory_space<vmem>>, vector<1x16x16xf32>
    %7 = vector.shape_cast %6 : vector<1x16x16xf32> to vector<16x16xf32>
    %c0_9 = arith.constant 0 : index
    %c0_10 = arith.constant 0 : index
    %8 = vector.load %arg7[%c0_9, %c0_10] : memref<128x128xf32, #tpu.memory_space<vmem>>, vector<128x128xf32>
    %c0_11 = arith.constant 0 : index
    %c0_12 = arith.constant 0 : index
    %c0_13 = arith.constant 0 : index
    %9 = vector.load %arg2[%c0_11, %c0_12, %c0_13] : memref<3x128x128xf32, #tpu.memory_space<vmem>>, vector<1x128x128xf32>
    %10 = vector.shape_cast %9 : vector<1x128x128xf32> to vector<128x128xf32>
    %cst = arith.constant dense<0.000000e+00> : vector<16x128xf32>
    %11 = tpu.matmul %1, %10, %cst {dimension_numbers = #tpu.dot_dimension_numbers<[1], [0], [0], [1], [0, 0, 1, 1], [], []>} : vector<16x128xf32>, vector<128x128xf32>, vector<16x128xf32> -> vector<16x128xf32>
    %c1_14 = arith.constant 1 : index
    %c0_15 = arith.constant 0 : index
    %c0_16 = arith.constant 0 : index
    %12 = vector.load %arg2[%c1_14, %c0_15, %c0_16] : memref<3x128x128xf32, #tpu.memory_space<vmem>>, vector<1x128x128xf32>
    %13 = vector.shape_cast %12 : vector<1x128x128xf32> to vector<128x128xf32>
    %cst_17 = arith.constant dense<0.000000e+00> : vector<16x128xf32>
    %14 = tpu.matmul %1, %13, %cst_17 {dimension_numbers = #tpu.dot_dimension_numbers<[1], [0], [0], [1], [0, 0, 1, 1], [], []>} : vector<16x128xf32>, vector<128x128xf32>, vector<16x128xf32> -> vector<16x128xf32>
    %c2_18 = arith.constant 2 : index
    %c0_19 = arith.constant 0 : index
    %c0_20 = arith.constant 0 : index
    %15 = vector.load %arg2[%c2_18, %c0_19, %c0_20] : memref<3x128x128xf32, #tpu.memory_space<vmem>>, vector<1x128x128xf32>
    %16 = vector.shape_cast %15 : vector<1x128x128xf32> to vector<128x128xf32>
    %cst_21 = arith.constant dense<0.000000e+00> : vector<16x128xf32>
    %17 = tpu.matmul %1, %16, %cst_21 {dimension_numbers = #tpu.dot_dimension_numbers<[1], [0], [0], [1], [0, 0, 1, 1], [], []>} : vector<16x128xf32>, vector<128x128xf32>, vector<16x128xf32> -> vector<16x128xf32>
    %cst_22 = arith.constant dense<0.000000e+00> : vector<16x128xf32>
    %18 = tpu.matmul %3, %11, %cst_22 {dimension_numbers = #tpu.dot_dimension_numbers<[1], [0], [0], [1], [0, 0, 1, 1], [], []>} : vector<16x16xf32>, vector<16x128xf32>, vector<16x128xf32> -> vector<16x128xf32>
    %19 = arith.addf %18, %14 : vector<16x128xf32>
    %cst_23 = arith.constant dense<0.000000e+00> : vector<16x128xf32>
    %20 = tpu.matmul %5, %17, %cst_23 {dimension_numbers = #tpu.dot_dimension_numbers<[1], [0], [0], [1], [0, 0, 1, 1], [], []>} : vector<16x16xf32>, vector<16x128xf32>, vector<16x128xf32> -> vector<16x128xf32>
    %21 = arith.addf %19, %20 : vector<16x128xf32>
    %c0_24 = arith.constant 0 : index
    %c0_25 = arith.constant 0 : index
    %22 = vector.load %arg3[%c0_24, %c0_25] : memref<1x128xf32, #tpu.memory_space<vmem>>, vector<1x128xf32>
    %23 = vector.broadcast %22 : vector<1x128xf32> to vector<16x128xf32>
    %24 = arith.addf %21, %23 : vector<16x128xf32>
    %cst_26 = arith.constant dense<0.000000e+00> : vector<16x128xf32>
    %25 = tpu.matmul %7, %24, %cst_26 {dimension_numbers = #tpu.dot_dimension_numbers<[1], [0], [0], [1], [0, 0, 1, 1], [], []>} : vector<16x16xf32>, vector<16x128xf32>, vector<16x128xf32> -> vector<16x128xf32>
    %cst_27 = arith.constant dense<0.000000e+00> : vector<16x128xf32>
    %26 = tpu.matmul %25, %8, %cst_27 {dimension_numbers = #tpu.dot_dimension_numbers<[1], [0], [0], [1], [0, 0, 1, 1], [], []>} : vector<16x128xf32>, vector<128x128xf32>, vector<16x128xf32> -> vector<16x128xf32>
    %cst_28 = arith.constant 3.906250e-03 : f32
    %27 = vector.broadcast %cst_28 : f32 to vector<16x128xf32>
    %28 = arith.mulf %26, %27 : vector<16x128xf32>
    %29 = arith.subf %24, %28 : vector<16x128xf32>
    %30 = arith.mulf %29, %29 : vector<16x128xf32>
    %cst_29 = arith.constant dense<0.000000e+00> : vector<16x128xf32>
    %31 = tpu.matmul %7, %30, %cst_29 {dimension_numbers = #tpu.dot_dimension_numbers<[1], [0], [0], [1], [0, 0, 1, 1], [], []>} : vector<16x16xf32>, vector<16x128xf32>, vector<16x128xf32> -> vector<16x128xf32>
    %cst_30 = arith.constant dense<0.000000e+00> : vector<16x128xf32>
    %32 = tpu.matmul %31, %8, %cst_30 {dimension_numbers = #tpu.dot_dimension_numbers<[1], [0], [0], [1], [0, 0, 1, 1], [], []>} : vector<16x128xf32>, vector<128x128xf32>, vector<16x128xf32> -> vector<16x128xf32>
    %cst_31 = arith.constant 3.906250e-03 : f32
    %33 = vector.broadcast %cst_31 : f32 to vector<16x128xf32>
    %34 = arith.mulf %32, %33 : vector<16x128xf32>
    %cst_32 = arith.constant 9.99999974E-6 : f32
    %35 = vector.broadcast %cst_32 : f32 to vector<16x128xf32>
    %36 = arith.addf %34, %35 : vector<16x128xf32>
    %37 = math.rsqrt %36 : vector<16x128xf32>
    %38 = arith.mulf %29, %37 : vector<16x128xf32>
    %cst_33 = arith.constant 0.000000e+00 : f32
    %39 = vector.broadcast %cst_33 : f32 to vector<16x128xf32>
    %40 = arith.maximumf %38, %39 : vector<16x128xf32>
    %c0_34 = arith.constant 0 : index
    %c0_35 = arith.constant 0 : index
    %c0_36 = arith.constant 0 : index
    %41 = vector.load %arg4[%c0_34, %c0_35, %c0_36] : memref<3x128x128xf32, #tpu.memory_space<vmem>>, vector<1x128x128xf32>
    %42 = vector.shape_cast %41 : vector<1x128x128xf32> to vector<128x128xf32>
    %cst_37 = arith.constant dense<0.000000e+00> : vector<16x128xf32>
    %43 = tpu.matmul %40, %42, %cst_37 {dimension_numbers = #tpu.dot_dimension_numbers<[1], [0], [0], [1], [0, 0, 1, 1], [], []>} : vector<16x128xf32>, vector<128x128xf32>, vector<16x128xf32> -> vector<16x128xf32>
    %c1_38 = arith.constant 1 : index
    %c0_39 = arith.constant 0 : index
    %c0_40 = arith.constant 0 : index
    %44 = vector.load %arg4[%c1_38, %c0_39, %c0_40] : memref<3x128x128xf32, #tpu.memory_space<vmem>>, vector<1x128x128xf32>
    %45 = vector.shape_cast %44 : vector<1x128x128xf32> to vector<128x128xf32>
    %cst_41 = arith.constant dense<0.000000e+00> : vector<16x128xf32>
    %46 = tpu.matmul %40, %45, %cst_41 {dimension_numbers = #tpu.dot_dimension_numbers<[1], [0], [0], [1], [0, 0, 1, 1], [], []>} : vector<16x128xf32>, vector<128x128xf32>, vector<16x128xf32> -> vector<16x128xf32>
    %c2_42 = arith.constant 2 : index
    %c0_43 = arith.constant 0 : index
    %c0_44 = arith.constant 0 : index
    %47 = vector.load %arg4[%c2_42, %c0_43, %c0_44] : memref<3x128x128xf32, #tpu.memory_space<vmem>>, vector<1x128x128xf32>
    %48 = vector.shape_cast %47 : vector<1x128x128xf32> to vector<128x128xf32>
    %cst_45 = arith.constant dense<0.000000e+00> : vector<16x128xf32>
    %49 = tpu.matmul %40, %48, %cst_45 {dimension_numbers = #tpu.dot_dimension_numbers<[1], [0], [0], [1], [0, 0, 1, 1], [], []>} : vector<16x128xf32>, vector<128x128xf32>, vector<16x128xf32> -> vector<16x128xf32>
    %cst_46 = arith.constant dense<0.000000e+00> : vector<16x128xf32>
    %50 = tpu.matmul %3, %43, %cst_46 {dimension_numbers = #tpu.dot_dimension_numbers<[1], [0], [0], [1], [0, 0, 1, 1], [], []>} : vector<16x16xf32>, vector<16x128xf32>, vector<16x128xf32> -> vector<16x128xf32>
    %51 = arith.addf %50, %46 : vector<16x128xf32>
    %cst_47 = arith.constant dense<0.000000e+00> : vector<16x128xf32>
    %52 = tpu.matmul %5, %49, %cst_47 {dimension_numbers = #tpu.dot_dimension_numbers<[1], [0], [0], [1], [0, 0, 1, 1], [], []>} : vector<16x16xf32>, vector<16x128xf32>, vector<16x128xf32> -> vector<16x128xf32>
    %53 = arith.addf %51, %52 : vector<16x128xf32>
    %c0_48 = arith.constant 0 : index
    %c0_49 = arith.constant 0 : index
    %54 = vector.load %arg5[%c0_48, %c0_49] : memref<1x128xf32, #tpu.memory_space<vmem>>, vector<1x128xf32>
    %55 = vector.broadcast %54 : vector<1x128xf32> to vector<16x128xf32>
    %56 = arith.addf %53, %55 : vector<16x128xf32>
    %cst_50 = arith.constant dense<0.000000e+00> : vector<16x128xf32>
    %57 = tpu.matmul %7, %56, %cst_50 {dimension_numbers = #tpu.dot_dimension_numbers<[1], [0], [0], [1], [0, 0, 1, 1], [], []>} : vector<16x16xf32>, vector<16x128xf32>, vector<16x128xf32> -> vector<16x128xf32>
    %cst_51 = arith.constant dense<0.000000e+00> : vector<16x128xf32>
    %58 = tpu.matmul %57, %8, %cst_51 {dimension_numbers = #tpu.dot_dimension_numbers<[1], [0], [0], [1], [0, 0, 1, 1], [], []>} : vector<16x128xf32>, vector<128x128xf32>, vector<16x128xf32> -> vector<16x128xf32>
    %cst_52 = arith.constant 3.906250e-03 : f32
    %59 = vector.broadcast %cst_52 : f32 to vector<16x128xf32>
    %60 = arith.mulf %58, %59 : vector<16x128xf32>
    %61 = arith.subf %56, %60 : vector<16x128xf32>
    %62 = arith.mulf %61, %61 : vector<16x128xf32>
    %cst_53 = arith.constant dense<0.000000e+00> : vector<16x128xf32>
    %63 = tpu.matmul %7, %62, %cst_53 {dimension_numbers = #tpu.dot_dimension_numbers<[1], [0], [0], [1], [0, 0, 1, 1], [], []>} : vector<16x16xf32>, vector<16x128xf32>, vector<16x128xf32> -> vector<16x128xf32>
    %cst_54 = arith.constant dense<0.000000e+00> : vector<16x128xf32>
    %64 = tpu.matmul %63, %8, %cst_54 {dimension_numbers = #tpu.dot_dimension_numbers<[1], [0], [0], [1], [0, 0, 1, 1], [], []>} : vector<16x128xf32>, vector<128x128xf32>, vector<16x128xf32> -> vector<16x128xf32>
    %cst_55 = arith.constant 3.906250e-03 : f32
    %65 = vector.broadcast %cst_55 : f32 to vector<16x128xf32>
    %66 = arith.mulf %64, %65 : vector<16x128xf32>
    %cst_56 = arith.constant 9.99999974E-6 : f32
    %67 = vector.broadcast %cst_56 : f32 to vector<16x128xf32>
    %68 = arith.addf %66, %67 : vector<16x128xf32>
    %69 = math.rsqrt %68 : vector<16x128xf32>
    %70 = arith.mulf %61, %69 : vector<16x128xf32>
    %71 = arith.addf %1, %70 : vector<16x128xf32>
    %72 = vector.shape_cast %71 : vector<16x128xf32> to vector<1x16x128xf32>
    %c0_57 = arith.constant 0 : index
    %c0_58 = arith.constant 0 : index
    %c0_59 = arith.constant 0 : index
    %73 = vector.load %arg8[%c0_57, %c0_58, %c0_59] : memref<1x16x128xf32, #tpu.memory_space<vmem>>, vector<1x16x128xf32>
    tpu.vector_store %arg8[%c0_57, %c0_58, %c0_59], %72 {strides = array<i32>} : memref<1x16x128xf32, #tpu.memory_space<vmem>>, vector<1x16x128xf32>,
    return
  }
  func.func @transform_0(%arg0: i32) -> (i32, i32, i32) {
    %c0_i32 = arith.constant 0 : i32
    %c0_i32_0 = arith.constant 0 : i32
    %c0_i32_1 = arith.constant 0 : i32
    return %arg0, %c0_i32, %c0_i32_0 : i32, i32, i32
  }
  func.func @transform_1(%arg0: i32) -> (i32, i32, i32) {
    %c0_i32 = arith.constant 0 : i32
    %c0_i32_0 = arith.constant 0 : i32
    %c0_i32_1 = arith.constant 0 : i32
    %c0_i32_2 = arith.constant 0 : i32
    return %c0_i32, %c0_i32_0, %c0_i32_1 : i32, i32, i32
  }
  func.func @transform_2(%arg0: i32) -> (i32, i32) {
    %c0_i32 = arith.constant 0 : i32
    %c0_i32_0 = arith.constant 0 : i32
    %c0_i32_1 = arith.constant 0 : i32
    return %c0_i32, %c0_i32_0 : i32, i32
  }
  func.func @transform_3(%arg0: i32) -> (i32, i32, i32) {
    %c0_i32 = arith.constant 0 : i32
    %c0_i32_0 = arith.constant 0 : i32
    %c0_i32_1 = arith.constant 0 : i32
    %c0_i32_2 = arith.constant 0 : i32
    return %c0_i32, %c0_i32_0, %c0_i32_1 : i32, i32, i32
  }
  func.func @transform_4(%arg0: i32) -> (i32, i32) {
    %c0_i32 = arith.constant 0 : i32
    %c0_i32_0 = arith.constant 0 : i32
    %c0_i32_1 = arith.constant 0 : i32
    return %c0_i32, %c0_i32_0 : i32, i32
  }
  func.func @transform_5(%arg0: i32) -> (i32, i32, i32) {
    %c0_i32 = arith.constant 0 : i32
    %c0_i32_0 = arith.constant 0 : i32
    %c0_i32_1 = arith.constant 0 : i32
    %c0_i32_2 = arith.constant 0 : i32
    return %c0_i32, %c0_i32_0, %c0_i32_1 : i32, i32, i32
  }
  func.func @transform_6(%arg0: i32) -> (i32, i32) {
    %c0_i32 = arith.constant 0 : i32
    %c0_i32_0 = arith.constant 0 : i32
    %c0_i32_1 = arith.constant 0 : i32
    return %c0_i32, %c0_i32_0 : i32, i32
  }
  func.func @transform_7(%arg0: i32) -> (i32, i32, i32) {
    %c0_i32 = arith.constant 0 : i32
    %c0_i32_0 = arith.constant 0 : i32
    %c0_i32_1 = arith.constant 0 : i32
    return %arg0, %c0_i32, %c0_i32_0 : i32, i32, i32
  }
}

</mosaic_0001>

<bundles_post_ra>
// kernel: tile.13
= control target key start
LH: loop header
LB: loop body
LE: loop exit
PB: predicated region body
PF: predicated region fallthrough
CT: control target
= control target key end

     0   :  { %s28_s0 = inlined_call_operand.vmem [shape: f32[8], index: 0, kind: input, shape index: {}]   ;;  %s29_s1 = inlined_call_operand.vmem [shape: f32[16,8], index: 1, kind: output, shape index: {}]  }
   0x1   :  { %v4_v0 = vld [vmem:[%s28_s0] ss:$0 sm:$0xff] }
   0x2   :  { %5 = vst [vmem:[%s29_s1] sm:$0xff] %v4_v0  ;;  %8 = vst [vmem:[%s29_s1 + $0x8] sm:$0xff] %v4_v0 }

// kernel: tile.14
= control target key start
LH: loop header
LB: loop body
LE: loop exit
PB: predicated region body
PF: predicated region fallthrough
CT: control target
= control target key end

     0   :  { %s131_s10 = smov 120   ;;  %s132_s11 = smov 104   ;;  %vm3_vm0 = vcmask 64512   ;;  %vm9_vm1 = vcmask 1048512   ;;  %vm15_vm2 = vcmask 982912   ;;  %vm21_vm3 = vcmask 917312   ;;  %s207_s0 = inlined_call_operand.vmem [shape: f32[16,8], index: 0, kind: input, shape index: {}]   ;;  %s208_s1 = inlined_call_operand.vmem [shape: f32[1,128], index: 1, kind: output, shape index: {}]  }
   0x1   :  { %v101_v0 = vld [vmem:[%s207_s0 + $0xf] sm:$0x1]   ;;  %v103_v1 = vld [vmem:[%s207_s0 + $0xd] sm:$0x1]   ;;  %v102_v2 = vld [vmem:[%s207_s0 + $0xe] sm:$0x1]  }
   0x2   :  { %7 = vrot.lane.b32.xlu0 %v101_v0, %s131_s10  ;;  %19 = vrot.lane.b32.xlu1 %v103_v1, %s132_s11  ;;  %v104_v3 = vld [vmem:[%s207_s0 + $0xc] sm:$0x1]   ;;  %s133_s16 = smov 112   ;;  %s134_s17 = smov 96   ;;  %v105_v4 = vld [vmem:[%s207_s0 + $0xb] sm:$0x1]  }
   0x3   :  { %v106_v5 = vld [vmem:[%s207_s0 + $0xa] sm:$0x1]   ;;  %v2_v6 = vld [vmem:[%s207_s0] sm:$0x1]   ;;  %s135_s24 = smov 88   ;;  %s136_s25 = smov 80  }
   0x4   :  { %4 = vst.msk [vmem:[#allocation0] sm:$0x1] %vm3_vm0, %v2_v6   ;;  %v107_v7 = vld [vmem:[%s207_s0 + $0x9] sm:$0x1]   ;;  %v108_v8 = vld [vmem:[%s207_s0 + $0x8] sm:$0x1]  }
   0x5   :  { %s137_s30 = smov 72   ;;  %s138_s2 = smov 64   ;;  %v109_v9 = vld [vmem:[%s207_s0 + $0x7] sm:$0x1]   ;;  %v110_v10 = vld [vmem:[%s207_s0 + $0x6] sm:$0x1]  }
   0x6   :  { %13 = vrot.lane.b32.xlu0 %v102_v2, %s133_s16  ;;  %25 = vrot.lane.b32.xlu1 %v104_v3, %s134_s17  ;;  %s139_s7 = smov 56   ;;  %s140_s8 = smov 48   ;;  %v111_v11 = vld [vmem:[%s207_s0 + $0x5] sm:$0x1]   ;;  %v112_v12 = vld [vmem:[%s207_s0 + $0x4] sm:$0x1]  }
   0x7   :  { %s141_s13 = smov 40   ;;  %s142_s14 = smov 32   ;;  %v113_v13 = vld [vmem:[%s207_s0 + $0x3] sm:$0x1]   ;;  %v114_v14 = vld [vmem:[%s207_s0 + $0x2] sm:$0x1]  }
   0x8   :  { %s143_s19 = smov 24   ;;  %s144_s20 = smov 16   ;;  %v115_v15 = vld [vmem:[%s207_s0 + $0x1] sm:$0x1]   ;;  %vm27_vm4 = vcmask 851712   ;;  %vm33_vm5 = vcmask 786112  }
   0x9   :  { %s145_s0 = smov 8   ;;  %vm39_vm6 = vcmask 720512   ;;  %vm45_vm7 = vcmask 654912   ;;  %vm51_vm8 = vcmask 589312   ;;  %vm57_vm9 = vcmask 523712  }
   0xa   :  { %31 = vrot.lane.b32.xlu0 %v105_v4, %s135_s24  ;;  %37 = vrot.lane.b32.xlu1 %v106_v5, %s136_s25  ;;  %vm63_vm10 = vcmask 458112   ;;  %vm69_vm11 = vcmask 392512   ;;  %vm75_vm12 = vcmask 326912   ;;  %vm81_vm13 = vcmask 261312  }
   0xb   :  { %vm87_vm14 = vcmask 195712   ;;  %vm93_vm15 = vcmask 130112  }
   0xe   :  { %43 = vrot.lane.b32.xlu0 %v107_v7, %s137_s30  ;;  %49 = vrot.lane.b32.xlu1 %v108_v8, %s138_s2 }
  0x12   :  { %55 = vrot.lane.b32.xlu0 %v109_v9, %s139_s7  ;;  %61 = vrot.lane.b32.xlu1 %v110_v10, %s140_s8 }
  0x16   :  { %67 = vrot.lane.b32.xlu0 %v111_v11, %s141_s13  ;;  %73 = vrot.lane.b32.xlu1 %v112_v12, %s142_s14 }
  0x1a   :  { %79 = vrot.lane.b32.xlu0 %v113_v13, %s143_s19  ;;  %85 = vrot.lane.b32.xlu1 %v114_v14, %s144_s20 }
  0x1e   :  { %91 = vrot.lane.b32.xlu0 %v115_v15, %s145_s0 }
  0x74   :  { %v8_v16 = vpop.permute.xlu0 %7   ;;  %v20_v17 = vpop.permute.xlu1 %19  }
  0x75   :  { %10 = vst.msk [vmem:[#allocation0] sm:$0x1] %vm9_vm1, %v8_v16  }
  0x78   :  { %v14_v18 = vpop.permute.xlu0 %13   ;;  %v26_v19 = vpop.permute.xlu1 %25  }
  0x79   :  { %16 = vst.msk [vmem:[#allocation0] sm:$0x1] %vm15_vm2, %v14_v18  }
  0x7a   :  { %22 = vst.msk [vmem:[#allocation0] sm:$0x1] %vm21_vm3, %v20_v17  }
  0x7b   :  { %28 = vst.msk [vmem:[#allocation0] sm:$0x1] %vm27_vm4, %v26_v19  }
  0x7c   :  { %v32_v20 = vpop.permute.xlu0 %31   ;;  %v38_v21 = vpop.permute.xlu1 %37  }
  0x7d   :  { %34 = vst.msk [vmem:[#allocation0] sm:$0x1] %vm33_vm5, %v32_v20  }
  0x7e   :  { %40 = vst.msk [vmem:[#allocation0] sm:$0x1] %vm39_vm6, %v38_v21  }
  0x80   :  { %v44_v22 = vpop.permute.xlu0 %43   ;;  %v50_v23 = vpop.permute.xlu1 %49  }
  0x81   :  { %46 = vst.msk [vmem:[#allocation0] sm:$0x1] %vm45_vm7, %v44_v22  }
  0x82   :  { %52 = vst.msk [vmem:[#allocation0] sm:$0x1] %vm51_vm8, %v50_v23  }
  0x84   :  { %v56_v24 = vpop.permute.xlu0 %55   ;;  %v62_v25 = vpop.permute.xlu1 %61  }
  0x85   :  { %58 = vst.msk [vmem:[#allocation0] sm:$0x1] %vm57_vm9, %v56_v24  }
  0x86   :  { %64 = vst.msk [vmem:[#allocation0] sm:$0x1] %vm63_vm10, %v62_v25  }
  0x88   :  { %v68_v26 = vpop.permute.xlu0 %67   ;;  %v74_v27 = vpop.permute.xlu1 %73  }
  0x89   :  { %70 = vst.msk [vmem:[#allocation0] sm:$0x1] %vm69_vm11, %v68_v26  }
  0x8a   :  { %76 = vst.msk [vmem:[#allocation0] sm:$0x1] %vm75_vm12, %v74_v27  }
  0x8c   :  { %v80_v28 = vpop.permute.xlu0 %79   ;;  %v86_v29 = vpop.permute.xlu1 %85  }
  0x8d   :  { %82 = vst.msk [vmem:[#allocation0] sm:$0x1] %vm81_vm13, %v80_v28  }
  0x8e   :  { %88 = vst.msk [vmem:[#allocation0] sm:$0x1] %vm87_vm14, %v86_v29  }
  0x90   :  { %v92_v30 = vpop.permute.xlu0 %91  }
  0x91   :  { %94 = vst.msk [vmem:[#allocation0] sm:$0x1] %vm93_vm15, %v92_v30  }
  0x98   :  { %v98_v31 = vld [vmem:[#allocation0] sm:$0x1] }
  0x99   :  { %100 = vst [vmem:[%s208_s1] sm:$0x1] %v98_v31 }

// kernel: residual_block.1
= control target key start
LH: loop header
LB: loop body
LE: loop exit
PB: predicated region body
PF: predicated region fallthrough
CT: control target
= control target key end

     0   :  { %s3026_s24 = smov 0   ;;  %s3560_s0 = inlined_call_operand.vmem [shape: f32[2,16,128], index: 0, kind: input, shape index: {}]   ;;  %s3561_s1 = inlined_call_operand.vmem [shape: f32[3,128,128], index: 1, kind: input, shape index: {}]   ;;  %s3562_s2 = inlined_call_operand.vmem [shape: f32[1,128], index: 2, kind: input, shape index: {}]   ;;  %s3563_s3 = inlined_call_operand.vmem [shape: f32[3,128,128], index: 3, kind: input, shape index: {}]   ;;  %s3564_s4 = inlined_call_operand.vmem [shape: f32[1,128], index: 4, kind: input, shape index: {}]   ;;  %s3565_s5 = inlined_call_operand.vmem [shape: f32[3,16,16], index: 5, kind: input, shape index: {}]   ;;  %s3566_s6 = inlined_call_operand.vmem [shape: f32[128,128], index: 6, kind: input, shape index: {}]   ;;  %s3567_s7 = inlined_call_operand.vmem [shape: f32[2,16,128], index: 7, kind: output, shape index: {}]  }
   0x1 LB: > { %s1885_s25 = sadd.s32 4294967295, %s2984_s24   ;;  %p1889_p0 = scmp.ge.s32.totalorder %s2984_s24, 1  ;;  %s2984_s24 = sphi %s3026_s24, %s17_s24  }
   0x2   : > { %p237_p1 = scmp.lt.s32.totalorder %s2984_s24, 3 }
   0x4   : > { %p238_p2 = pnand %p1889_p0, %p237_p1 }
   0x5   : > { %v305_v0 = vld [vmem:[%s3561_s1] sm:$0xff] (!%p238_p2)  ;;  %v306_v1 = vld [vmem:[%s3561_s1 + $0x8] sm:$0xff] (!%p238_p2)  ;;  %v307_v2 = vld [vmem:[%s3561_s1 + $0x10] sm:$0xff] (!%p238_p2)  ;;  %p269_p3 = scmp.lt.s32.totalorder (!%p238_p2), %s1885_s25, 1  ;;  %vm580_vm0 = vcmask (!%p238_p2), 130048  }
   0x6   : > { %241 = sbr.rel (%p238_p2) target bundleno = 2757 (0xac5), region = 48  ;;  %v2602_v3 = vpack.c.bf16 (!%p238_p2), %v306_v1, %v305_v0  ;;  %v308_v4 = vld [vmem:[%s3561_s1 + $0x18] sm:$0xff] (!%p238_p2)  ;;  %v309_v6 = vld [vmem:[%s3561_s1 + $0x20] sm:$0xff] (!%p238_p2)  ;;  %v310_v7 = vld [vmem:[%s3561_s1 + $0x28] sm:$0xff] (!%p238_p2) }
   0x7   : > { %v2606_v5 = vpack.c.bf16 (!%p238_p2), %v308_v4, %v307_v2  ;;  %v2610_v8 = vpack.c.bf16 (!%p238_p2), %v310_v7, %v309_v6  ;;  %v311_v9 = vld [vmem:[%s3561_s1 + $0x30] sm:$0xff] (!%p238_p2)  ;;  %v312_v10 = vld [vmem:[%s3561_s1 + $0x38] sm:$0xff] (!%p238_p2)  ;;  %v313_v13 = vld [vmem:[%s3561_s1 + $0x40] sm:$0xff] (!%p238_p2) }
   0x8   : > { %2603 = vmatprep.subr.bf16.mxu0 (!%p238_p2), %v2602_v3  ;;  %v2614_v12 = vpack.c.bf16 (!%p238_p2), %v312_v10, %v311_v9  ;;  %v314_v14 = vld [vmem:[%s3561_s1 + $0x48] sm:$0xff] (!%p238_p2)  ;;  %v1898_v15 = vld [vmem:[%s3561_s1 + $0x80] sm:$0xff] (!%p238_p2)  ;;  %v1900_v18 = vld [vmem:[%s3561_s1 + $0x90] sm:$0xff] (!%p238_p2) }
   0x9   : > { %2605 = vmatpush3.bf16.msra.mxu0 (!%p238_p2), %v2602_v3  ;;  %v1899_v16 = vld [vmem:[%s3561_s1 + $0x88] sm:$0xff] (!%p238_p2)  ;;  %v1901_v19 = vld [vmem:[%s3561_s1 + $0x98] sm:$0xff] (!%p238_p2)  ;;  %v2618_v20 = vpack.c.bf16 (!%p238_p2), %v314_v14, %v313_v13  ;;  %v1902_v22 = vld [vmem:[%s3561_s1 + $0xa0] sm:$0xff] (!%p238_p2) }
   0xa   : > { %2607 = vmatprep.subr.bf16.mxu0 (!%p238_p2), %v2606_v5  ;;  %v2634_v17 = vpack.c.bf16 (!%p238_p2), %v1899_v16, %v1898_v15  ;;  %v2638_v21 = vpack.c.bf16 (!%p238_p2), %v1901_v19, %v1900_v18  ;;  %v1903_v23 = vld [vmem:[%s3561_s1 + $0xa8] sm:$0xff] (!%p238_p2)  ;;  %v315_v24 = vld [vmem:[%s3561_s1 + $0x50] sm:$0xff] (!%p238_p2)  ;;  %v316_v25 = vld [vmem:[%s3561_s1 + $0x58] sm:$0xff] (!%p238_p2) }
   0xb   : > { %v2642_v26 = vpack.c.bf16 (!%p238_p2), %v1903_v23, %v1902_v22  ;;  %v2622_v27 = vpack.c.bf16 (!%p238_p2), %v316_v25, %v315_v24  ;;  %v1904_v28 = vld [vmem:[%s3561_s1 + $0xb0] sm:$0xff] (!%p238_p2)  ;;  %v1905_v29 = vld [vmem:[%s3561_s1 + $0xb8] sm:$0xff] (!%p238_p2)  ;;  %v317_v30 = vld [vmem:[%s3561_s1 + $0x60] sm:$0xff] (!%p238_p2) }
   0xc   : > { %2635 = vmatprep.subr.bf16.mxu1 (!%p238_p2), %v2634_v17  ;;  %v318_v31 = vld [vmem:[%s3561_s1 + $0x68] sm:$0xff] (!%p238_p2)  ;;  %v2646_v32 = vpack.c.bf16 (!%p238_p2), %v1905_v29, %v1904_v28  ;;  %v1906_v34 = vld [vmem:[%s3561_s1 + $0xc0] sm:$0xff] (!%p238_p2)  ;;  %v319_v36 = vld [vmem:[%s3561_s1 + $0x70] sm:$0xff] (!%p238_p2) }
   0xd   : > { %s3569_s25 = smov (!%p269_p3, %s1885_s25), 1  ;;  %2609 = vmatpush3.bf16.msra.mxu0 %v2606_v5  ;;  %2637 = vmatpush3.bf16.msra.mxu1 %v2634_v17  ;;  %v2626_v33 = vpack.c.bf16 %v318_v31, %v317_v30  ;;  %v1907_v35 = vld [vmem:[%s3561_s1 + $0xc8] sm:$0xff]  ;;  %v320_v37 = vld [vmem:[%s3561_s1 + $0x78] sm:$0xff]  ;;  %v1908_v40 = vld [vmem:[%s3561_s1 + $0xd0] sm:$0xff] }
   0xe   : > { %s1982_s15 = sshll.u32 %s3569_s25, 4  ;;  %2611 = vmatprep.subr.bf16.mxu0 %v2610_v8  ;;  %2639 = vmatprep.subr.bf16.mxu1 %v2638_v21  ;;  %v2650_v38 = vpack.c.bf16 %v1907_v35, %v1906_v34  ;;  %v2630_v39 = vpack.c.bf16 %v320_v37, %v319_v36  ;;  %v1909_v41 = vld [vmem:[%s3561_s1 + $0xd8] sm:$0xff]  ;;  %v1914_v42 = vld [vmem:[%s3561_s1 + $0x100] sm:$0xff]  ;;  %v1915_v43 = vld [vmem:[%s3561_s1 + $0x108] sm:$0xff] }
   0xf   : > { %s3060_s18 = scalar_lea.vmem %s3560_s0, %s1982_s15  ;;  %v2654_v44 = vpack.c.bf16 %v1909_v41, %v1908_v40  ;;  %v2666_v45 = vpack.c.bf16 %v1915_v43, %v1914_v42  ;;  %v1916_v46 = vld [vmem:[%s3561_s1 + $0x110] sm:$0xff]  ;;  %v1917_v47 = vld [vmem:[%s3561_s1 + $0x118] sm:$0xff]  ;;  %v1910_v48 = vld [vmem:[%s3561_s1 + $0xe0] sm:$0xff]  ;;  %s278_s10 = scalar_lea.vmem %s3567_s7, %s1982_s15 }
  0x10   : > { %v3069_v11 = vld [vmem:[%s3060_s18] sm:$0xff]  ;;  %v1911_v49 = vld [vmem:[%s3561_s1 + $0xe8] sm:$0xff]  ;;  %v2670_v51 = vpack.c.bf16 %v1917_v47, %v1916_v46  ;;  %v1920_v56 = vld [vmem:[%s3561_s1 + $0x130] sm:$0xff] }
  0x11   : > { %2228 = vmatprep.mubr.f32.mxu0 %v3069_v11  ;;  %2263 = vmatprep.mubr.f32.mxu1 %v3069_v11  ;;  %v3152_v50 = vld [vmem:[%s3060_s18 + $0x8] sm:$0xff]  ;;  %v2658_v52 = vpack.c.bf16 %v1911_v49, %v1910_v48  ;;  %v1918_v53 = vld [vmem:[%s3561_s1 + $0x120] sm:$0xff]  ;;  %v1921_v57 = vld [vmem:[%s3561_s1 + $0x138] sm:$0xff] }
  0x12   : > { %2613 = vmatpush3.bf16.msra.mxu0 %v2610_v8  ;;  %2641 = vmatpush3.bf16.msra.mxu1 %v2638_v21  ;;  %v1919_v54 = vld [vmem:[%s3561_s1 + $0x128] sm:$0xff]  ;;  %v2678_v58 = vpack.c.bf16 %v1921_v57, %v1920_v56  ;;  %v1922_v59 = vld [vmem:[%s3561_s1 + $0x140] sm:$0xff]  ;;  %v1924_v62 = vld [vmem:[%s3561_s1 + $0x150] sm:$0xff] }
  0x13   : > { %2615 = vmatprep.subr.bf16.mxu0 %v2614_v12  ;;  %2643 = vmatprep.subr.bf16.mxu1 %v2642_v26  ;;  %v2674_v55 = vpack.c.bf16 %v1919_v54, %v1918_v53  ;;  %v1923_v60 = vld [vmem:[%s3561_s1 + $0x148] sm:$0xff]  ;;  %v1925_v63 = vld [vmem:[%s3561_s1 + $0x158] sm:$0xff]  ;;  %v1926_v1 = vld [vmem:[%s3561_s1 + $0x160] sm:$0xff] }
  0x14   : > { %v2682_v61 = vpack.c.bf16 %v1923_v60, %v1922_v59  ;;  %v2686_v0 = vpack.c.bf16 %v1925_v63, %v1924_v62  ;;  %v1927_v2 = vld [vmem:[%s3561_s1 + $0x168] sm:$0xff]  ;;  %v1928_v4 = vld [vmem:[%s3561_s1 + $0x170] sm:$0xff]  ;;  %v1929_v5 = vld [vmem:[%s3561_s1 + $0x178] sm:$0xff] }
  0x15   : > { %v2690_v3 = vpack.c.bf16 %v1927_v2, %v1926_v1  ;;  %v2694_v6 = vpack.c.bf16 %v1929_v5, %v1928_v4  ;;  %v1912_v7 = vld [vmem:[%s3561_s1 + $0xf0] sm:$0xff]  ;;  %v1913_v8 = vld [vmem:[%s3561_s1 + $0xf8] sm:$0xff]  ;;  %v3203_v10 = vld [vmem:[%s3565_s5] sm:$0xff] }
  0x16   : > { %2617 = vmatpush3.bf16.msra.mxu0 %v2614_v12  ;;  %2645 = vmatpush3.bf16.msra.mxu1 %v2642_v26  ;;  %v2662_v9 = vpack.c.bf16 %v1913_v8, %v1912_v7  ;;  %v3210_v15 = vld [vmem:[%s3565_s5 + $0x8] sm:$0xff]  ;;  %v3215_v16 = vld [vmem:[%s3565_s5 + $0x10] sm:$0xff]  ;;  %v3231_v21 = vld [vmem:[%s3565_s5 + $0x20] sm:$0xff] }
  0x17   : > { %2619 = vmatprep.subr.bf16.mxu0 %v2618_v20  ;;  %2647 = vmatprep.subr.bf16.mxu1 %v2646_v32  ;;  %v289_v22 = vld [vmem:[%s3566_s6] sm:$0xff]  ;;  %v290_v23 = vld [vmem:[%s3566_s6 + $0x8] sm:$0xff]  ;;  %v291_v25 = vld [vmem:[%s3566_s6 + $0x10] sm:$0xff] }
  0x18   : > { %v3241_v24 = vpack.c.bf16 %v290_v23, %v289_v22  ;;  %v292_v26 = vld [vmem:[%s3566_s6 + $0x18] sm:$0xff]  ;;  %v293_v28 = vld [vmem:[%s3566_s6 + $0x20] sm:$0xff]  ;;  %v294_v29 = vld [vmem:[%s3566_s6 + $0x28] sm:$0xff] }
  0x19   : > { %v3260_v30 = vpack.c.bf16 %v294_v29, %v293_v28  ;;  %v295_v31 = vld [vmem:[%s3566_s6 + $0x30] sm:$0xff]  ;;  %v297_v34 = vld [vmem:[%s3566_s6 + $0x40] sm:$0xff]  ;;  %v298_v35 = vld [vmem:[%s3566_s6 + $0x48] sm:$0xff] }
  0x1a   : > { %2621 = vmatpush3.bf16.msra.mxu0 %v2618_v20  ;;  %2649 = vmatpush3.bf16.msra.mxu1 %v2646_v32  ;;  %v3224_v20 = vld [vmem:[%s3565_s5 + $0x18] sm:$0xff]  ;;  %v3280_v36 = vpack.c.bf16 %v298_v35, %v297_v34  ;;  %v299_v37 = vld [vmem:[%s3566_s6 + $0x50] sm:$0xff]  ;;  %v301_v40 = vld [vmem:[%s3566_s6 + $0x60] sm:$0xff] }
  0x1b   : > { %2623 = vmatprep.subr.bf16.mxu0 %v2622_v27  ;;  %2651 = vmatprep.subr.bf16.mxu1 %v2650_v38  ;;  %v296_v32 = vld [vmem:[%s3566_s6 + $0x38] sm:$0xff]  ;;  %v302_v41 = vld [vmem:[%s3566_s6 + $0x68] sm:$0xff]  ;;  %v303_v43 = vld [vmem:[%s3566_s6 + $0x70] sm:$0xff] }
  0x1c   : > { %v3300_v42 = vpack.c.bf16 %v302_v41, %v301_v40  ;;  %v1934_v46 = vld [vmem:[%s3562_s2] ss:$0 sm:$0xff]  ;;  %v3321_v53 = vld [vmem:[%s3565_s5 + $0x28] sm:$0xff]  ;;  %v1079_v7 = vld [vmem:[%s3563_s3 + $0x18] sm:$0xff] }
  0x1d   : > { %v1076_v1 = vld [vmem:[%s3563_s3] sm:$0xff]  ;;  %v1077_v2 = vld [vmem:[%s3563_s3 + $0x8] sm:$0xff]  ;;  %v1082_v29 = vld [vmem:[%s3563_s3 + $0x30] sm:$0xff] }
  0x1e   : > { %2625 = vmatpush3.bf16.msra.mxu0 %v2622_v27  ;;  %2653 = vmatpush3.bf16.msra.mxu1 %v2650_v38  ;;  %v3249_v27 = vpack.c.bf16 %v292_v26, %v291_v25  ;;  %v300_v38 = vld [vmem:[%s3566_s6 + $0x58] sm:$0xff]  ;;  %v2778_v4 = vpack.c.bf16 %v1077_v2, %v1076_v1  ;;  %v1940_v5 = vld [vmem:[%s3563_s3 + $0x88] sm:$0xff]  ;;  %v1943_v25 = vld [vmem:[%s3563_s3 + $0xa0] sm:$0xff] }
  0x1f   : > { %2627 = vmatprep.subr.bf16.mxu0 %v2626_v33  ;;  %2655 = vmatprep.subr.bf16.mxu1 %v2654_v44  ;;  %v1944_v26 = vld [vmem:[%s3563_s3 + $0xa8] sm:$0xff]  ;;  %v1945_v34 = vld [vmem:[%s3563_s3 + $0xb0] sm:$0xff]  ;;  %v1946_v35 = vld [vmem:[%s3563_s3 + $0xb8] sm:$0xff] }
  0x20   : > { %v2818_v28 = vpack.c.bf16 %v1944_v26, %v1943_v25  ;;  %v1085_v40 = vld [vmem:[%s3563_s3 + $0x48] sm:$0xff]  ;;  %v1953_v1 = vld [vmem:[%s3563_s3 + $0xf0] sm:$0xff]  ;;  %v1954_v2 = vld [vmem:[%s3563_s3 + $0xf8] sm:$0xff] }
  0x21   : > { %v1957_v25 = vld [vmem:[%s3563_s3 + $0x110] sm:$0xff]  ;;  %v1958_v26 = vld [vmem:[%s3563_s3 + $0x118] sm:$0xff] }
  0x22   : > { %2629 = vmatpush3.bf16.msra.mxu0 %v2626_v33  ;;  %2657 = vmatpush3.bf16.msra.mxu1 %v2654_v44  ;;  %v3270_v33 = vpack.c.bf16 %v296_v32, %v295_v31  ;;  %v304_v44 = vld [vmem:[%s3566_s6 + $0x78] sm:$0xff] }
  0x23   : > { %2631 = vmatprep.subr.bf16.mxu0 %v2630_v39  ;;  %2659 = vmatprep.subr.bf16.mxu1 %v2658_v52  ;;  %v1083_v31 = vld [vmem:[%s3563_s3 + $0x38] sm:$0xff] }
  0x24   : > { %v2790_v32 = vpack.c.bf16 %v1083_v31, %v1082_v29  ;;  %v2846_v31 = vpack.c.bf16 %v1958_v26, %v1957_v25 }
  0x26   : > { %2633 = vmatpush3.bf16.msra.mxu0 %v2630_v39  ;;  %2661 = vmatpush3.bf16.msra.mxu1 %v2658_v52  ;;  %v3290_v39 = vpack.c.bf16 %v300_v38, %v299_v37  ;;  %v2822_v37 = vpack.c.bf16 %v1946_v35, %v1945_v34  ;;  %v1084_v38 = vld [vmem:[%s3563_s3 + $0x40] sm:$0xff]  ;;  %v1961_v34 = vld [vmem:[%s3563_s3 + $0x130] sm:$0xff]  ;;  %v1962_v35 = vld [vmem:[%s3563_s3 + $0x138] sm:$0xff] }
  0x27   : > { %2667 = vmatprep.subr.bf16.mxu0 %v2666_v45  ;;  %2663 = vmatprep.subr.bf16.mxu1 %v2662_v9  ;;  %v2794_v41 = vpack.c.bf16 %v1085_v40, %v1084_v38  ;;  %v1963_v38 = vld [vmem:[%s3563_s3 + $0x140] sm:$0xff]  ;;  %v1964_v40 = vld [vmem:[%s3563_s3 + $0x148] sm:$0xff] }
  0x29   : > { %2229 = vmatmul.mubr.f32.vlgmr.msra.gmra.mrb[0].mxu0 %v3152_v50 }
  0x2a   : > { %2669 = vmatpush3.bf16.msra.mxu0 %v2666_v45  ;;  %2298 = vmatprep.mubr.f32.mxu0 %v3069_v11  ;;  %v3310_v45 = vpack.c.bf16 %v304_v44, %v303_v43  ;;  %v1947_v43 = vld [vmem:[%s3563_s3 + $0xc0] sm:$0xff]  ;;  %v1948_v44 = vld [vmem:[%s3563_s3 + $0xc8] sm:$0xff] }
  0x2b   : > { %2671 = vmatprep.subr.bf16.mxu0 %v2670_v51  ;;  %2665 = vmatpush3.bf16.msra.mxu1 %v2662_v9 }
  0x2e   : > { %2673 = vmatpush3.bf16.msra.mxu0 %v2670_v51  ;;  %2264 = vmatmul.mubr.f32.vlgmr.msra.gmra.mrb[0].mxu1 %v3152_v50 }
  0x2f   : > { %2675 = vmatprep.subr.bf16.mxu0 %v2674_v55  ;;  %2305 = vmatprep.mubr.msk.f32.mxu1 %vm580_vm0, %v3203_v10 }
  0x32   : > { %2677 = vmatpush3.bf16.msra.mxu0 %v2674_v55 }
  0x33   : > { %2679 = vmatprep.subr.bf16.mxu0 %v2678_v58 }
  0x36   : > { %2681 = vmatpush3.bf16.msra.mxu0 %v2678_v58 }
  0x37   : > { %2683 = vmatprep.subr.bf16.mxu0 %v2682_v61 }
  0x3a   : > { %2685 = vmatpush3.bf16.msra.mxu0 %v2682_v61 }
  0x3b   : > { %2687 = vmatprep.subr.bf16.mxu0 %v2686_v0 }
  0x3e   : > { %2689 = vmatpush3.bf16.msra.mxu0 %v2686_v0 }
  0x3f   : > { %2691 = vmatprep.subr.bf16.mxu0 %v2690_v3 }
  0x42   : > { %2693 = vmatpush3.bf16.msra.mxu0 %v2690_v3  ;;  %v1939_v3 = vld [vmem:[%s3563_s3 + $0x80] sm:$0xff] }
  0x43   : > { %2695 = vmatprep.subr.bf16.mxu0 %v2694_v6  ;;  %v2810_v8 = vpack.c.bf16 %v1940_v5, %v1939_v3  ;;  %v1955_v5 = vld [vmem:[%s3563_s3 + $0x100] sm:$0xff] }
  0x46   : > { %2697 = vmatpush3.bf16.msra.mxu0 %v2694_v6  ;;  %v1078_v6 = vld [vmem:[%s3563_s3 + $0x10] sm:$0xff] }
  0x47   : > { %2747 = vmatprep.subr.bf16.mxu0 %v3241_v24  ;;  %v2782_v9 = vpack.c.bf16 %v1079_v7, %v1078_v6  ;;  %v1956_v6 = vld [vmem:[%s3563_s3 + $0x108] sm:$0xff] }
  0x48   : > { %v2842_v7 = vpack.c.bf16 %v1956_v6, %v1955_v5 }
  0x49   : > { %2299 = vmatmul.mubr.f32.vlgmr.msra.gmra.mrb[2].mxu0 %v3152_v50 }
  0x4a   : > { %2749 = vmatpush3.bf16.msra.mxu0 %v3241_v24 }
  0x4b   : > { %2751 = vmatprep.subr.bf16.mxu0 %v3249_v27 }
  0x4e   : > { %2753 = vmatpush3.bf16.msra.mxu0 %v3249_v27 }
  0x4f   : > { %2755 = vmatprep.subr.bf16.mxu0 %v3260_v30 }
  0x52   : > { %2757 = vmatpush3.bf16.msra.mxu0 %v3260_v30 }
  0x53   : > { %2759 = vmatprep.subr.bf16.mxu0 %v3270_v33 }
  0x56   : > { %2761 = vmatpush3.bf16.msra.mxu0 %v3270_v33 }
  0x57   : > { %2763 = vmatprep.subr.bf16.mxu0 %v3280_v36 }
  0x5a   : > { %2765 = vmatpush3.bf16.msra.mxu0 %v3280_v36 }
  0x5b   : > { %2767 = vmatprep.subr.bf16.mxu0 %v3290_v39 }
  0x5e   : > { %2769 = vmatpush3.bf16.msra.mxu0 %v3290_v39 }
  0x5f   : > { %2771 = vmatprep.subr.bf16.mxu0 %v3300_v42 }
  0x62   : > { %2773 = vmatpush3.bf16.msra.mxu0 %v3300_v42 }
  0x63   : > { %2775 = vmatprep.subr.bf16.mxu0 %v3310_v45 }
  0x66   : > { %2777 = vmatpush3.bf16.msra.mxu0 %v3310_v45 }
  0x67   : > { %2811 = vmatprep.subr.bf16.mxu0 %v2810_v8 }
  0xfc   : > { %v2230_v12 = vpop.f32.mrb[0].mxu0 }
  0xfd   : > { %v387_v13 = vpop.f32.mrb[1].mxu0 }
  0xfe   : > { %v2698_v14 = vpack.c.bf16 %v2230_v12, %v387_v13  ;;  %v1080_v12 = vld [vmem:[%s3563_s3 + $0x20] sm:$0xff]  ;;  %v1081_v13 = vld [vmem:[%s3563_s3 + $0x28] sm:$0xff] }
 0x100   : > { %2699 = vmatprep.subr.bf16.mxu1 %v2698_v14 }
 0x101   : > { %2701 = vmatpush3.bf16.msra.mxu1 %v2698_v14  ;;  %v2786_v14 = vpack.c.bf16 %v1081_v13, %v1080_v12 }
 0x104   : > { %2306 = vmatmul.mubr.msk.f32.vlgmr.msra.gmra.mrb[0].mxu1 %vm580_vm0, %v3210_v15 }
 0x105   : > { %2312 = vmatprep.mubr.msk.f32.mxu1 %vm580_vm0, %v3215_v16 }
 0x11c   : > { %v2300_v17 = vpop.f32.mrb[2].mxu0 }
 0x11d   : > { %v571_v18 = vpop.f32.mrb[3].mxu0 }
 0x11e   : > { %v2702_v19 = vpack.c.bf16 %v2300_v17, %v571_v18  ;;  %v1941_v17 = vld [vmem:[%s3563_s3 + $0x90] sm:$0xff]  ;;  %v1942_v18 = vld [vmem:[%s3563_s3 + $0x98] sm:$0xff] }
 0x11f   : > { %v2814_v23 = vpack.c.bf16 %v1942_v18, %v1941_v17 }
 0x120   : > { %2703 = vmatprep.subr.bf16.mxu1 %v2702_v19 }
 0x121   : > { %2705 = vmatpush3.bf16.msra.mxu1 %v2702_v19 }
 0x124   : > { %2313 = vmatmul.mubr.msk.f32.vlgmr.msra.gmra.mrb[0].mxu1 %vm580_vm0, %v3224_v20 }
 0x125   : > { %2319 = vmatprep.mubr.msk.f32.mxu1 %vm580_vm0, %v3231_v21 }
 0x1f7   : > { %v2314_v47 = vpop.f32.mrb[0].mxu1 }
 0x1f8   : > { %v753_v48 = vadd.f32 %v2314_v47, %v1934_v46  ;;  %v734_v49 = vpop.f32.mrb[1].mxu1  ;;  %v1086_v47 = vld [vmem:[%s3563_s3 + $0x50] sm:$0xff] }
 0x1f9   : > { %v752_v51 = vadd.f32 %v1934_v46, %v734_v49  ;;  %v2826_v46 = vpack.c.bf16 %v1948_v44, %v1947_v43  ;;  %v1949_v49 = vld [vmem:[%s3563_s3 + $0xd0] sm:$0xff]  ;;  %v1966_v43 = vld [vmem:[%s3563_s3 + $0x158] sm:$0xff] }
 0x1fb   : > { %v2706_v52 = vpack.c.bf16 %v753_v48, %v752_v51 }
 0x1fd   : > { %2707 = vmatprep.subr.bf16.mxu1 %v2706_v52 }
 0x1fe   : > { %2709 = vmatpush3.bf16.msra.mxu1 %v2706_v52  ;;  %v1950_v52 = vld [vmem:[%s3563_s3 + $0xd8] sm:$0xff] }
 0x1ff   : > { %2711 = vmatprep.subr.bf16.mxu1 %v3241_v24 }
 0x201   : > { %2320 = vmatmul.mubr.msk.f32.vlgmr.msra.gmra.mrb[2].mxu1 %vm580_vm0, %v3321_v53 }
 0x202   : > { %2713 = vmatpush3.bf16.msra.mxu1 %v3241_v24 }
 0x203   : > { %2715 = vmatprep.subr.bf16.mxu1 %v3249_v27 }
 0x206   : > { %2717 = vmatpush3.bf16.msra.mxu1 %v3249_v27 }
 0x207   : > { %2719 = vmatprep.subr.bf16.mxu1 %v3260_v30 }
 0x20a   : > { %2721 = vmatpush3.bf16.msra.mxu1 %v3260_v30 }
 0x20b   : > { %2723 = vmatprep.subr.bf16.mxu1 %v3270_v33 }
 0x20e   : > { %2725 = vmatpush3.bf16.msra.mxu1 %v3270_v33 }
 0x20f   : > { %2727 = vmatprep.subr.bf16.mxu1 %v3280_v36 }
 0x212   : > { %2729 = vmatpush3.bf16.msra.mxu1 %v3280_v36 }
 0x213   : > { %2731 = vmatprep.subr.bf16.mxu1 %v3290_v39 }
 0x216   : > { %2733 = vmatpush3.bf16.msra.mxu1 %v3290_v39 }
 0x217   : > { %2735 = vmatprep.subr.bf16.mxu1 %v3300_v42 }
 0x21a   : > { %2737 = vmatpush3.bf16.msra.mxu1 %v3300_v42 }
 0x21b   : > { %2739 = vmatprep.subr.bf16.mxu1 %v3310_v45 }
 0x21e   : > { %2741 = vmatpush3.bf16.msra.mxu1 %v3310_v45 }
 0x2d4   : > { %v2321_v54 = vpop.f32.mrb[2].mxu1 }
 0x2d5   : > { %v826_v55 = vpop.f32.mrb[3].mxu1 }
 0x2d6   : > { %2354 = vmatprep.mubr.f32.mxu1 %v826_v55  ;;  %v1089_v55 = vld [vmem:[%s3563_s3 + $0x68] sm:$0xff] }
 0x2d7   : > { %2355 = vmatmul.mubr.f32.vlgmr.msra.gmra.mrb[4].mxu1 %v2321_v54  ;;  %v1088_v54 = vld [vmem:[%s3563_s3 + $0x60] sm:$0xff] }
 0x2d8   : > { %2361 = vmatprep.mubr.msk.f32.mxu1 %vm580_vm0, %v3231_v21 }
 0x3aa   : > { %v2356_v56 = vpop.f32.mrb[4].mxu1 }
 0x3ab   : > { %v911_v57 = vmul.f32 0.00390625, %v2356_v56  ;;  %v901_v58 = vpop.f32.mrb[5].mxu1  ;;  %v2830_v56 = vpack.c.bf16 %v1950_v52, %v1949_v49  ;;  %v1969_v49 = vld [vmem:[%s3563_s3 + $0x170] sm:$0xff] }
 0x3ac   : > { %v910_v59 = vmul.f32 0.00390625, %v901_v58  ;;  %v1951_v58 = vld [vmem:[%s3563_s3 + $0xe0] sm:$0xff] }
 0x3ad   : > { %v3343_v60 = vsub.f32 %v753_v48, %v911_v57  ;;  %v1087_v48 = vld [vmem:[%s3563_s3 + $0x58] sm:$0xff]  ;;  %v2802_v57 = vpack.c.bf16 %v1089_v55, %v1088_v54 }
 0x3ae   : > { %v3345_v61 = vsub.f32 %v752_v51, %v910_v59  ;;  %v2798_v51 = vpack.c.bf16 %v1087_v48, %v1086_v47  ;;  %v1952_v59 = vld [vmem:[%s3563_s3 + $0xe8] sm:$0xff] }
 0x3af   : > { %v915_v62 = vmul.f32 %v3343_v60, %v3343_v60  ;;  %v1968_v47 = vld [vmem:[%s3563_s3 + $0x168] sm:$0xff] }
 0x3b0   : > { %v914_v63 = vmul.f32 %v3345_v61, %v3345_v61 }
 0x3b2   : > { %v2742_v0 = vpack.c.bf16 %v915_v62, %v914_v63  ;;  %v1090_v62 = vld [vmem:[%s3563_s3 + $0x70] sm:$0xff]  ;;  %v2834_v63 = vpack.c.bf16 %v1952_v59, %v1951_v58 }
 0x3b4   : > { %2743 = vmatprep.subr.bf16.mxu1 %v2742_v0 }
 0x3b5   : > { %2745 = vmatpush3.bf16.msra.mxu1 %v2742_v0  ;;  %v1091_v0 = vld [vmem:[%s3563_s3 + $0x78] sm:$0xff] }
 0x3b6   : > { %2779 = vmatprep.subr.bf16.mxu1 %v2778_v4  ;;  %v2806_v3 = vpack.c.bf16 %v1091_v0, %v1090_v62  ;;  %v1975_v62 = vld [vmem:[%s3564_s4] ss:$0 sm:$0xff] }
 0x3b8   : > { %2362 = vmatmul.mubr.msk.f32.vlgmr.msra.gmra.mrb[6].mxu1 %vm580_vm0, %v3321_v53 }
 0x3b9   : > { %2781 = vmatpush3.bf16.msra.mxu1 %v2778_v4  ;;  %v2838_v4 = vpack.c.bf16 %v1954_v2, %v1953_v1 }
 0x3ba   : > { %2783 = vmatprep.subr.bf16.mxu1 %v2782_v9 }
 0x3bd   : > { %2785 = vmatpush3.bf16.msra.mxu1 %v2782_v9 }
 0x3be   : > { %2787 = vmatprep.subr.bf16.mxu1 %v2786_v14 }
 0x3c1   : > { %2789 = vmatpush3.bf16.msra.mxu1 %v2786_v14 }
 0x3c2   : > { %2791 = vmatprep.subr.bf16.mxu1 %v2790_v32 }
 0x3c5   : > { %2793 = vmatpush3.bf16.msra.mxu1 %v2790_v32  ;;  %v1959_v32 = vld [vmem:[%s3563_s3 + $0x120] sm:$0xff] }
 0x3c6   : > { %2795 = vmatprep.subr.bf16.mxu1 %v2794_v41 }
 0x3c9   : > { %2797 = vmatpush3.bf16.msra.mxu1 %v2794_v41  ;;  %v1965_v41 = vld [vmem:[%s3563_s3 + $0x150] sm:$0xff] }
 0x3ca   : > { %2799 = vmatprep.subr.bf16.mxu1 %v2798_v51  ;;  %v2862_v44 = vpack.c.bf16 %v1966_v43, %v1965_v41 }
 0x3cd   : > { %2801 = vmatpush3.bf16.msra.mxu1 %v2798_v51  ;;  %v1970_v51 = vld [vmem:[%s3563_s3 + $0x178] sm:$0xff] }
 0x3ce   : > { %2803 = vmatprep.subr.bf16.mxu1 %v2802_v57  ;;  %v2870_v52 = vpack.c.bf16 %v1970_v51, %v1969_v49 }
 0x3d1   : > { %2805 = vmatpush3.bf16.msra.mxu1 %v2802_v57 }
 0x3d2   : > { %2807 = vmatprep.subr.bf16.mxu1 %v2806_v3 }
 0x3d5   : > { %2809 = vmatpush3.bf16.msra.mxu1 %v2806_v3 }
 0x3d6   : > { %2843 = vmatprep.subr.bf16.mxu1 %v2842_v7 }
 0x48b   : > { %v2363_v19 = vpop.f32.mrb[6].mxu1 }
 0x48c   : > { %v982_v22 = vpop.f32.mrb[7].mxu1 }
 0x48d   : > { %2396 = vmatprep.mubr.f32.mxu0 %v982_v22 }
 0x48e   : > { %2397 = vmatmul.mubr.f32.vlgmr.msra.gmra.mrb[4].mxu0 %v2363_v19 }
 0x48f   : > { %2813 = vmatpush3.bf16.msra.mxu0 %v2810_v8 }
 0x490   : > { %2815 = vmatprep.subr.bf16.mxu0 %v2814_v23 }
 0x493   : > { %2817 = vmatpush3.bf16.msra.mxu0 %v2814_v23 }
 0x494   : > { %2819 = vmatprep.subr.bf16.mxu0 %v2818_v28 }
 0x497   : > { %2821 = vmatpush3.bf16.msra.mxu0 %v2818_v28 }
 0x498   : > { %2823 = vmatprep.subr.bf16.mxu0 %v2822_v37 }
 0x49b   : > { %2825 = vmatpush3.bf16.msra.mxu0 %v2822_v37  ;;  %v2854_v37 = vpack.c.bf16 %v1962_v35, %v1961_v34 }
 0x49c   : > { %2827 = vmatprep.subr.bf16.mxu0 %v2826_v46 }
 0x49f   : > { %2829 = vmatpush3.bf16.msra.mxu0 %v2826_v46  ;;  %v1967_v46 = vld [vmem:[%s3563_s3 + $0x160] sm:$0xff] }
 0x4a0   : > { %2831 = vmatprep.subr.bf16.mxu0 %v2830_v56  ;;  %v2866_v48 = vpack.c.bf16 %v1968_v47, %v1967_v46 }
 0x4a3   : > { %2833 = vmatpush3.bf16.msra.mxu0 %v2830_v56 }
 0x4a4   : > { %2835 = vmatprep.subr.bf16.mxu0 %v2834_v63 }
 0x4a7   : > { %2837 = vmatpush3.bf16.msra.mxu0 %v2834_v63 }
 0x4a8   : > { %2839 = vmatprep.subr.bf16.mxu0 %v2838_v4 }
 0x4ab   : > { %2841 = vmatpush3.bf16.msra.mxu0 %v2838_v4 }
 0x561   : > { %v2398_v8 = vpop.f32.mrb[4].mxu0 }
 0x562   : > { %v1067_v9 = vmul.f32 0.00390625, %v2398_v8  ;;  %v1057_v12 = vpop.f32.mrb[5].mxu0 }
 0x563   : > { %v1066_v13 = vmul.f32 0.00390625, %v1057_v12 }
 0x564   : > { %v1069_v14 = vadd.f32 1e-05, %v1067_v9 }
 0x565   : > { %v1068_v17 = vadd.f32 1e-05, %v1066_v13 }
 0x566   : > { %2970 = vrsqrt.f32 %v1069_v14 }
 0x567   : > { %2972 = vrsqrt.f32 %v1068_v17 }
 0x570   : > { %v2971_v18 = vpop.eup %2970 }
 0x571   : > { %v2973_v19 = vpop.eup %2972  ;;  %v1073_v22 = vmul.f32 %v2971_v18, %v3343_v60  ;;  %v1960_v60 = vld [vmem:[%s3563_s3 + $0x128] sm:$0xff] }
 0x572   : > { %v1072_v23 = vmul.f32 %v2973_v19, %v3345_v61  ;;  %v2850_v61 = vpack.c.bf16 %v1960_v60, %v1959_v32 }
 0x573   : > { %v1075_v29 = vmax.f32 %v1073_v22, 0.0 }
 0x574   : > { %v1074_v28 = vmax.f32 %v1072_v23, 0.0 }
 0x576   : > { %2431 = vmatprep.mubr.f32.mxu1 %v1074_v28  ;;  %2466 = vmatprep.mubr.f32.mxu0 %v1074_v28 }
 0x577   : > { %2432 = vmatmul.mubr.f32.vlgmr.msra.gmra.mrb[8].mxu1 %v1075_v29  ;;  %2467 = vmatmul.mubr.f32.vlgmr.msra.gmra.mrb[6].mxu0 %v1075_v29 }
 0x578   : > { %2845 = vmatpush3.bf16.msra.mxu1 %v2842_v7  ;;  %2501 = vmatprep.mubr.f32.mxu1 %v1074_v28 }
 0x579   : > { %2847 = vmatprep.subr.bf16.mxu1 %v2846_v31  ;;  %2508 = vmatprep.mubr.msk.f32.mxu0 %vm580_vm0, %v3203_v10  ;;  %v2858_v10 = vpack.c.bf16 %v1964_v40, %v1963_v38 }
 0x57c   : > { %2849 = vmatpush3.bf16.msra.mxu1 %v2846_v31 }
 0x57d   : > { %2851 = vmatprep.subr.bf16.mxu1 %v2850_v61 }
 0x580   : > { %2853 = vmatpush3.bf16.msra.mxu1 %v2850_v61 }
 0x581   : > { %2855 = vmatprep.subr.bf16.mxu1 %v2854_v37 }
 0x584   : > { %2857 = vmatpush3.bf16.msra.mxu1 %v2854_v37 }
 0x585   : > { %2859 = vmatprep.subr.bf16.mxu1 %v2858_v10 }
 0x588   : > { %2861 = vmatpush3.bf16.msra.mxu1 %v2858_v10 }
 0x589   : > { %2863 = vmatprep.subr.bf16.mxu1 %v2862_v44 }
 0x58c   : > { %2865 = vmatpush3.bf16.msra.mxu1 %v2862_v44 }
 0x58d   : > { %2867 = vmatprep.subr.bf16.mxu1 %v2866_v48 }
 0x590   : > { %2869 = vmatpush3.bf16.msra.mxu1 %v2866_v48 }
 0x591   : > { %2871 = vmatprep.subr.bf16.mxu1 %v2870_v52 }
 0x594   : > { %2873 = vmatpush3.bf16.msra.mxu1 %v2870_v52 }
 0x595   : > { %2887 = vmatprep.subr.bf16.mxu1 %v3241_v24 }
 0x597   : > { %2502 = vmatmul.mubr.f32.vlgmr.msra.gmra.mrb[10].mxu1 %v1075_v29 }
 0x598   : > { %2889 = vmatpush3.bf16.msra.mxu1 %v3241_v24 }
 0x599   : > { %2891 = vmatprep.subr.bf16.mxu1 %v3249_v27 }
 0x59c   : > { %2893 = vmatpush3.bf16.msra.mxu1 %v3249_v27 }
 0x59d   : > { %2895 = vmatprep.subr.bf16.mxu1 %v3260_v30 }
 0x5a0   : > { %2897 = vmatpush3.bf16.msra.mxu1 %v3260_v30 }
 0x5a1   : > { %2899 = vmatprep.subr.bf16.mxu1 %v3270_v33 }
 0x5a4   : > { %2901 = vmatpush3.bf16.msra.mxu1 %v3270_v33 }
 0x5a5   : > { %2903 = vmatprep.subr.bf16.mxu1 %v3280_v36 }
 0x5a8   : > { %2905 = vmatpush3.bf16.msra.mxu1 %v3280_v36 }
 0x5a9   : > { %2907 = vmatprep.subr.bf16.mxu1 %v3290_v39 }
 0x5ac   : > { %2909 = vmatpush3.bf16.msra.mxu1 %v3290_v39 }
 0x5ad   : > { %2911 = vmatprep.subr.bf16.mxu1 %v3300_v42 }
 0x5b0   : > { %2913 = vmatpush3.bf16.msra.mxu1 %v3300_v42 }
 0x5b1   : > { %2915 = vmatprep.subr.bf16.mxu1 %v3310_v45 }
 0x5b4   : > { %2917 = vmatpush3.bf16.msra.mxu1 %v3310_v45 }
 0x64a   : > { %v2433_v54 = vpop.f32.mrb[8].mxu1 }
 0x64b   : > { %v1158_v55 = vpop.f32.mrb[9].mxu1 }
 0x64c   : > { %v2874_v56 = vpack.c.bf16 %v2433_v54, %v1158_v55 }
 0x64e   : > { %2875 = vmatprep.subr.bf16.mxu0 %v2874_v56 }
 0x64f   : > { %2877 = vmatpush3.bf16.msra.mxu0 %v2874_v56 }
 0x652   : > { %2509 = vmatmul.mubr.msk.f32.vlgmr.msra.gmra.mrb[6].mxu0 %vm580_vm0, %v3210_v15 }
 0x653   : > { %2515 = vmatprep.mubr.msk.f32.mxu0 %vm580_vm0, %v3215_v16 }
 0x66a   : > { %v2503_v57 = vpop.f32.mrb[10].mxu1 }
 0x66b   : > { %v1342_v58 = vpop.f32.mrb[11].mxu1 }
 0x66c   : > { %v2878_v59 = vpack.c.bf16 %v2503_v57, %v1342_v58 }
 0x66e   : > { %2879 = vmatprep.subr.bf16.mxu0 %v2878_v59 }
 0x66f   : > { %2881 = vmatpush3.bf16.msra.mxu0 %v2878_v59 }
 0x672   : > { %2516 = vmatmul.mubr.msk.f32.vlgmr.msra.gmra.mrb[6].mxu0 %vm580_vm0, %v3224_v20 }
 0x673   : > { %2522 = vmatprep.mubr.msk.f32.mxu0 %vm580_vm0, %v3231_v21 }
 0x745   : > { %v2517_v63 = vpop.f32.mrb[6].mxu0 }
 0x746   : > { %v1511_v15 = vadd.f32 %v2517_v63, %v1975_v62  ;;  %v1492_v0 = vpop.f32.mrb[7].mxu0 }
 0x747   : > { %v1510_v1 = vadd.f32 %v1975_v62, %v1492_v0 }
 0x749   : > { %v2882_v16 = vpack.c.bf16 %v1511_v15, %v1510_v1 }
 0x74b   : > { %2883 = vmatprep.subr.bf16.mxu0 %v2882_v16 }
 0x74c   : > { %2885 = vmatpush3.bf16.msra.mxu0 %v2882_v16 }
 0x74f   : > { %2523 = vmatmul.mubr.msk.f32.vlgmr.msra.gmra.mrb[8].mxu0 %vm580_vm0, %v3321_v53 }
 0x750   : > { %2564 = vmatprep.mubr.msk.f32.mxu0 %vm580_vm0, %v3231_v21 }
 0x822   : > { %v2524_v20 = vpop.f32.mrb[8].mxu0 }
 0x823   : > { %v1578_v2 = vpop.f32.mrb[9].mxu0 }
 0x824   : > { %2557 = vmatprep.mubr.f32.mxu1 %v1578_v2 }
 0x825   : > { %2558 = vmatmul.mubr.f32.vlgmr.msra.gmra.mrb[12].mxu1 %v2524_v20 }
 0x8f8   : > { %v2559_v3 = vpop.f32.mrb[12].mxu1 }
 0x8f9   : > { %v1663_v4 = vmul.f32 0.00390625, %v2559_v3  ;;  %v1653_v5 = vpop.f32.mrb[13].mxu1 }
 0x8fa   : > { %v1662_v6 = vmul.f32 0.00390625, %v1653_v5 }
 0x8fb   : > { %v1665_v7 = vsub.f32 %v1511_v15, %v1663_v4 }
 0x8fc   : > { %v1664_v8 = vsub.f32 %v1510_v1, %v1662_v6 }
 0x8fd   : > { %v1667_v9 = vmul.f32 %v1665_v7, %v1665_v7 }
 0x8fe   : > { %v1666_v12 = vmul.f32 %v1664_v8, %v1664_v8 }
 0x900   : > { %v2918_v13 = vpack.c.bf16 %v1667_v9, %v1666_v12 }
 0x902   : > { %2919 = vmatprep.subr.bf16.mxu0 %v2918_v13 }
 0x903   : > { %2921 = vmatpush3.bf16.msra.mxu0 %v2918_v13 }
 0x904   : > { %2923 = vmatprep.subr.bf16.mxu0 %v3241_v24 }
 0x906   : > { %2565 = vmatmul.mubr.msk.f32.vlgmr.msra.gmra.mrb[10].mxu0 %vm580_vm0, %v3321_v53 }
 0x907   : > { %2925 = vmatpush3.bf16.msra.mxu0 %v3241_v24 }
 0x908   : > { %2927 = vmatprep.subr.bf16.mxu0 %v3249_v27 }
 0x90b   : > { %2929 = vmatpush3.bf16.msra.mxu0 %v3249_v27 }
 0x90c   : > { %2931 = vmatprep.subr.bf16.mxu0 %v3260_v30 }
 0x90f   : > { %2933 = vmatpush3.bf16.msra.mxu0 %v3260_v30 }
 0x910   : > { %2935 = vmatprep.subr.bf16.mxu0 %v3270_v33 }
 0x913   : > { %2937 = vmatpush3.bf16.msra.mxu0 %v3270_v33 }
 0x914   : > { %2939 = vmatprep.subr.bf16.mxu0 %v3280_v36 }
 0x917   : > { %2941 = vmatpush3.bf16.msra.mxu0 %v3280_v36 }
 0x918   : > { %2943 = vmatprep.subr.bf16.mxu0 %v3290_v39 }
 0x91b   : > { %2945 = vmatpush3.bf16.msra.mxu0 %v3290_v39 }
 0x91c   : > { %2947 = vmatprep.subr.bf16.mxu0 %v3300_v42 }
 0x91f   : > { %2949 = vmatpush3.bf16.msra.mxu0 %v3300_v42 }
 0x920   : > { %2951 = vmatprep.subr.bf16.mxu0 %v3310_v45 }
 0x923   : > { %2953 = vmatpush3.bf16.msra.mxu0 %v3310_v45 }
 0x9d9   : > { %v2566_v21 = vpop.f32.mrb[10].mxu0 }
 0x9da   : > { %v1734_v24 = vpop.f32.mrb[11].mxu0 }
 0x9db   : > { %2599 = vmatprep.mubr.f32.mxu0 %v1734_v24 }
 0x9dc   : > { %2600 = vmatmul.mubr.f32.vlgmr.msra.gmra.mrb[12].mxu0 %v2566_v21 }
 0xaaf   : > { %v2601_v27 = vpop.f32.mrb[12].mxu0 }
 0xab0   : > { %v1819_v30 = vmul.f32 0.00390625, %v2601_v27  ;;  %v1809_v33 = vpop.f32.mrb[13].mxu0 }
 0xab1   : > { %v1818_v36 = vmul.f32 0.00390625, %v1809_v33 }
 0xab2   : > { %v1821_v53 = vadd.f32 1e-05, %v1819_v30 }
 0xab3   : > { %v1820_v14 = vadd.f32 1e-05, %v1818_v36 }
 0xab4   : > { %2974 = vrsqrt.f32 %v1821_v53 }
 0xab5   : > { %2976 = vrsqrt.f32 %v1820_v14 }
 0xabe   : > { %v2975_v39 = vpop.eup %2974 }
 0xabf   : > { %v2977_v17 = vpop.eup %2976  ;;  %v1825_v42 = vmul.f32 %v2975_v39, %v1665_v7 }
 0xac0   : > { %v1824_v45 = vmul.f32 %v2977_v17, %v1664_v8 }
 0xac1   : > { %v1827_v18 = vadd.f32 %v1825_v42, %v3152_v50 }
 0xac2   : > { %v1826_v19 = vadd.f32 %v1824_v45, %v3069_v11 }
 0xac3   : > { %1829 = vst [vmem:[%s278_s10 + $0x8] sm:$0xff] %v1827_v18 }
 0xac4   : > { %1828 = vst [vmem:[%s278_s10] sm:$0xff] %v1826_v19 }
 0xac5 PF: > { %s17_s24 = sadd.s32 1, %s2984_s24  }
 0xac6   : > { %p14_p4 = scmp.ge.s32.totalorder %s17_s24, 4  }
 0xac8   :  { %16 = sbr.rel (!%p14_p4) target bundleno = 1 (0x1), region = 84 }

</bundles_post_ra>
